<compile_context>
chip_gen: v7x
topology: tpu7x:2x2x1
jax: 0.10.0
libtpu: 0.0.40
codegen_flags: <defaults>
</compile_context>

<pallas_src>
import functools

import jax
import jax.numpy as jnp
from jax import lax
from jax.experimental import pallas as pl
from jax.experimental.pallas import tpu as pltpu


def _inv_bottleneck_kernel(C, HID, KK, shifts,
                           x_ref, w1_ref, t1_ref, dw_ref, t2_ref,
                           m_ref, w3_ref, t3_ref, o_ref):
    """One image per grid step. All tensors are (channels, H*W) with H*W on lanes."""
    x = x_ref[...].astype(jnp.float32)                       # (C, HW)

    # ---- conv1 (1x1, dim -> hidden) + folded bias/BN + relu: VPU broadcast-MACs ----
    h = x[0:1, :] * w1_ref[:, 0:1]                           # (1,HW)*(HID,1) -> (HID,HW)
    for c in range(1, C):
        h = h + x[c:c + 1, :] * w1_ref[:, c:c + 1]
    h = jnp.maximum(h + t1_ref[...], 0.0)                    # (HID, HW)

    # ---- conv2: KxK depthwise, stride 1, same padding ----
    # Static lane rolls of the flattened spatial axis + per-tap border masks,
    # entirely in vregs (no VMEM scratch round trip).
    acc = None
    for t in range(KK):
        s = shifts[t]
        if s == 0:
            win = h                                          # center tap: mask is all-ones
        else:
            win = pltpu.roll(h, shift=s, axis=1) * m_ref[t:t + 1, :]
        term = win * dw_ref[:, t:t + 1]                      # per-channel tap weight
        acc = term if acc is None else acc + term
    h2 = jnp.maximum(acc + t2_ref[...], 0.0)                 # (HID, HW)

    # ---- conv3 (1x1, hidden -> dim) + folded bias/BN + residual + relu ----
    y = h2[0:1, :] * w3_ref[:, 0:1]                          # (1,HW)*(C,1) -> (C,HW)
    for d in range(1, HID):
        y = y + h2[d:d + 1, :] * w3_ref[:, d:d + 1]
    y = jnp.maximum(y + t3_ref[...] + x, 0.0)                # (C, HW)
    o_ref[...] = y.astype(o_ref.dtype)


def inv_bottleneck_block(x, params, kernel_size):
    """x: (N, C, H, W) float32, NCHW layout (same as the PyTorch module)."""
    N, C, H, W = x.shape
    HID = params["w1"].shape[1]
    K = kernel_size
    P = (K - 1) // 2
    HW = H * W
    KK = K * K

    # ---- wrapper-side folding: conv bias + BN affine into weights / shifts ----
    w1t = (params["w1"] * params["s1"]).T.astype(jnp.float32)                    # (HID, C)
    t1 = (params["b1"] * params["s1"] + params["t1"]).reshape(HID, 1)
    dwt = (params["dw"] * params["s2"].reshape(1, 1, HID)).reshape(KK, HID).T    # (HID, KK)
    t2 = (params["b2"] * params["s2"] + params["t2"]).reshape(HID, 1)
    w3t = (params["w3"] * params["s3"]).T.astype(jnp.float32)                    # (C, HID)
    t3 = (params["b3"] * params["s3"] + params["t3"]).reshape(C, 1)

    # ---- static per-tap lane shifts + border masks for the depthwise conv ----
    # flattened index i = y*W + x; tap (dy,dx) reads h[i + dy*W + dx] where valid.
    shifts = []
    yy, xx = jnp.meshgrid(jnp.arange(H), jnp.arange(W), indexing="ij")
    mask_rows = []
    for kh in range(K):
        for kw in range(K):
            dy, dx = kh - P, kw - P
            shifts.append((-(dy * W + dx)) % HW)             # roll(h, s)[i] = h[i - s]
            m = ((yy + dy >= 0) & (yy + dy < H) & (xx + dx >= 0) & (xx + dx < W))
            mask_rows.append(m.reshape(HW).astype(jnp.float32))
    masks = jnp.stack(mask_rows)                             # (KK, HW)
    shifts = tuple(shifts)

    x_flat = x.reshape(N, C, HW)                             # free reshape of NCHW

    def full_spec(shape):
        return pl.BlockSpec(shape, lambda n, _r=len(shape): (0,) * _r)

    in_specs = [
        pl.BlockSpec((None, C, HW), lambda n: (n, 0, 0)),    # x: one image per step
        full_spec((HID, C)),                                 # w1t (BN-folded)
        full_spec((HID, 1)),                                 # t1  (bias+BN shift)
        full_spec((HID, KK)),                                # depthwise weights (BN-folded)
        full_spec((HID, 1)),                                 # t2
        full_spec((KK, HW)),                                 # border masks
        full_spec((C, HID)),                                 # w3t (BN-folded)
        full_spec((C, 1)),                                   # t3
    ]

    kernel = functools.partial(_inv_bottleneck_kernel, C, HID, KK, shifts)

    out = pl.pallas_call(
        kernel,
        out_shape=jax.ShapeDtypeStruct((N, C, HW), x.dtype),
        grid_spec=pltpu.PrefetchScalarGridSpec(
            num_scalar_prefetch=0,
            grid=(N,),
            in_specs=in_specs,
            out_specs=pl.BlockSpec((None, C, HW), lambda n: (n, 0, 0)),
        ),
        compiler_params=pltpu.CompilerParams(
            dimension_semantics=("parallel",)),              # batch is independent (2x on v7x)
    )(x_flat, w1t, t1, dwt, t2, masks, w3t, t3)
    return out.reshape(N, C, H, W)


def make_params(key, dim, kernel_size, expand_ratio=4):
    """Deterministic synthetic parameters (matching the PyTorch module's shapes)."""
    hid = round(dim * expand_ratio)
    K = kernel_size
    eps = 1e-5
    ks = jax.random.split(key, 20)

    def bn_fold(kg, kb, km, kv, ch):
        gamma = jax.random.uniform(kg, (1, ch), jnp.float32, 0.5, 1.5)
        beta = 0.1 * jax.random.normal(kb, (1, ch), jnp.float32)
        mean = 0.1 * jax.random.normal(km, (1, ch), jnp.float32)
        var = jax.random.uniform(kv, (1, ch), jnp.float32, 0.5, 1.5)
        scale = gamma / jnp.sqrt(var + eps)
        shift = beta - mean * scale
        return scale, shift

    s1, t1 = bn_fold(ks[4], ks[5], ks[6], ks[7], hid)
    s2, t2 = bn_fold(ks[8], ks[9], ks[10], ks[11], hid)
    s3, t3 = bn_fold(ks[12], ks[13], ks[14], ks[15], dim)

    params = dict(
        w1=0.3 * jax.random.normal(ks[0], (dim, hid), jnp.float32),
        b1=0.1 * jax.random.normal(ks[1], (1, hid), jnp.float32),
        dw=0.3 * jax.random.normal(ks[2], (K, K, hid), jnp.float32),
        b2=0.1 * jax.random.normal(ks[16], (1, hid), jnp.float32),
        w3=0.3 * jax.random.normal(ks[3], (hid, dim), jnp.float32),
        b3=0.1 * jax.random.normal(ks[17], (1, dim), jnp.float32),
        s1=s1, t1=t1, s2=s2, t2=t2, s3=s3, t3=t3,
    )
    return params


def reference(x, p, K):
    """Pure-JAX reference of the same forward pass (NCHW)."""
    hp = lax.Precision.HIGHEST

    def bn(z, s, t):
        return z * s.reshape(1, -1, 1, 1) + t.reshape(1, -1, 1, 1)

    h = jnp.einsum("nchw,cd->ndhw", x, p["w1"], precision=hp) + p["b1"].reshape(1, -1, 1, 1)
    h = jax.nn.relu(bn(h, p["s1"], p["t1"]))

    dw = p["dw"].reshape(K, K, 1, -1)  # HWIO with I = in_ch/groups = 1
    h2 = lax.conv_general_dilated(
        h, dw, window_strides=(1, 1), padding="SAME",
        dimension_numbers=("NCHW", "HWIO", "NCHW"),
        feature_group_count=h.shape[1], precision=hp)
    h2 = h2 + p["b2"].reshape(1, -1, 1, 1)
    h2 = jax.nn.relu(bn(h2, p["s2"], p["t2"]))

    y = jnp.einsum("ndhw,dc->nchw", h2, p["w3"], precision=hp) + p["b3"].reshape(1, -1, 1, 1)
    y = bn(y, p["s3"], p["t3"])
    return jax.nn.relu(y + x)


if __name__ == "__main__":
    N, dim, H, W = 2, 4, 16, 16
    kernel_size, expand_ratio = 3, 4

    key = jax.random.PRNGKey(0)
    kx, kp = jax.random.split(key)
    # NCHW input, same layout as the PyTorch module: (2, 4, 16, 16)
    x = jax.random.normal(kx, (N, dim, H, W), jnp.float32)
    params = make_params(kp, dim, kernel_size, expand_ratio)

    out = jax.block_until_ready(inv_bottleneck_block(x, params, kernel_size))
    ref = jax.block_until_ready(reference(x, params, kernel_size))

    assert out.shape == ref.shape == (N, dim, H, W)
    assert jnp.allclose(out, ref, atol=1e-3, rtol=1e-3), (
        float(jnp.max(jnp.abs(out - ref))))

    print("KERNEL_OK")
</pallas_src>

<mosaic_0001>
module attributes {stable_mosaic.version = 11 : i64} {
  func.func @_inv_bottleneck_kernel(%arg0: i32, %arg1: memref<1x4x256xf32, #tpu.memory_space<vmem>>, %arg2: memref<16x4xf32, #tpu.memory_space<vmem>>, %arg3: memref<16x1xf32, #tpu.memory_space<vmem>>, %arg4: memref<16x9xf32, #tpu.memory_space<vmem>>, %arg5: memref<16x1xf32, #tpu.memory_space<vmem>>, %arg6: memref<9x256xf32, #tpu.memory_space<vmem>>, %arg7: memref<4x16xf32, #tpu.memory_space<vmem>>, %arg8: memref<4x1xf32, #tpu.memory_space<vmem>>, %arg9: memref<1x4x256xf32, #tpu.memory_space<vmem>>) attributes {dimension_semantics = [#tpu.dimension_semantics<parallel>], iteration_bounds = array<i64: 2>, scalar_prefetch = 0 : i64, scratch_operands = 0 : i64, tpu.core_type = #tpu.core_type<tc>, window_params = [{transform_indices = @transform_0, window_bounds = array<i64: 1, 4, 256>}, {pipeline_mode = #tpu.pipeline_mode<synchronous>, transform_indices = @transform_1, window_bounds = array<i64: 16, 4>}, {pipeline_mode = #tpu.pipeline_mode<synchronous>, transform_indices = @transform_2, window_bounds = array<i64: 16, 1>}, {pipeline_mode = #tpu.pipeline_mode<synchronous>, transform_indices = @transform_3, window_bounds = array<i64: 16, 9>}, {pipeline_mode = #tpu.pipeline_mode<synchronous>, transform_indices = @transform_4, window_bounds = array<i64: 16, 1>}, {pipeline_mode = #tpu.pipeline_mode<synchronous>, transform_indices = @transform_5, window_bounds = array<i64: 9, 256>}, {pipeline_mode = #tpu.pipeline_mode<synchronous>, transform_indices = @transform_6, window_bounds = array<i64: 4, 16>}, {pipeline_mode = #tpu.pipeline_mode<synchronous>, transform_indices = @transform_7, window_bounds = array<i64: 4, 1>}, {transform_indices = @transform_8, window_bounds = array<i64: 1, 4, 256>}]} {
    %c0 = arith.constant 0 : index
    %c0_0 = arith.constant 0 : index
    %c0_1 = arith.constant 0 : index
    %0 = vector.load %arg1[%c0, %c0_0, %c0_1] : memref<1x4x256xf32, #tpu.memory_space<vmem>>, vector<1x4x256xf32>
    %1 = vector.shape_cast %0 : vector<1x4x256xf32> to vector<4x256xf32>
    %2 = vector.extract_strided_slice %1 {offsets = [0, 0], sizes = [1, 256], strides = [1, 1]} : vector<4x256xf32> to vector<1x256xf32>
    %c0_2 = arith.constant 0 : index
    %c0_3 = arith.constant 0 : index
    %3 = vector.load %arg2[%c0_2, %c0_3] : memref<16x4xf32, #tpu.memory_space<vmem>>, vector<16x1xf32>
    %4 = vector.broadcast %2 : vector<1x256xf32> to vector<16x256xf32>
    %5 = vector.broadcast %3 : vector<16x1xf32> to vector<16x256xf32>
    %6 = arith.mulf %4, %5 : vector<16x256xf32>
    %7 = vector.extract_strided_slice %1 {offsets = [1, 0], sizes = [1, 256], strides = [1, 1]} : vector<4x256xf32> to vector<1x256xf32>
    %c0_4 = arith.constant 0 : index
    %c1 = arith.constant 1 : index
    %8 = vector.load %arg2[%c0_4, %c1] : memref<16x4xf32, #tpu.memory_space<vmem>>, vector<16x1xf32>
    %9 = vector.broadcast %7 : vector<1x256xf32> to vector<16x256xf32>
    %10 = vector.broadcast %8 : vector<16x1xf32> to vector<16x256xf32>
    %11 = arith.mulf %9, %10 : vector<16x256xf32>
    %12 = arith.addf %6, %11 : vector<16x256xf32>
    %13 = vector.extract_strided_slice %1 {offsets = [2, 0], sizes = [1, 256], strides = [1, 1]} : vector<4x256xf32> to vector<1x256xf32>
    %c0_5 = arith.constant 0 : index
    %c2 = arith.constant 2 : index
    %14 = vector.load %arg2[%c0_5, %c2] : memref<16x4xf32, #tpu.memory_space<vmem>>, vector<16x1xf32>
    %15 = vector.broadcast %13 : vector<1x256xf32> to vector<16x256xf32>
    %16 = vector.broadcast %14 : vector<16x1xf32> to vector<16x256xf32>
    %17 = arith.mulf %15, %16 : vector<16x256xf32>
    %18 = arith.addf %12, %17 : vector<16x256xf32>
    %19 = vector.extract_strided_slice %1 {offsets = [3, 0], sizes = [1, 256], strides = [1, 1]} : vector<4x256xf32> to vector<1x256xf32>
    %c0_6 = arith.constant 0 : index
    %c3 = arith.constant 3 : index
    %20 = vector.load %arg2[%c0_6, %c3] : memref<16x4xf32, #tpu.memory_space<vmem>>, vector<16x1xf32>
    %21 = vector.broadcast %19 : vector<1x256xf32> to vector<16x256xf32>
    %22 = vector.broadcast %20 : vector<16x1xf32> to vector<16x256xf32>
    %23 = arith.mulf %21, %22 : vector<16x256xf32>
    %24 = arith.addf %18, %23 : vector<16x256xf32>
    %c0_7 = arith.constant 0 : index
    %c0_8 = arith.constant 0 : index
    %25 = vector.load %arg3[%c0_7, %c0_8] : memref<16x1xf32, #tpu.memory_space<vmem>>, vector<16x1xf32>
    %26 = vector.broadcast %25 : vector<16x1xf32> to vector<16x256xf32>
    %27 = arith.addf %24, %26 : vector<16x256xf32>
    %cst = arith.constant 0.000000e+00 : f32
    %28 = vector.broadcast %cst : f32 to vector<16x256xf32>
    %29 = arith.maximumf %27, %28 : vector<16x256xf32>
    %c17_i32 = arith.constant 17 : i32
    %30 = tpu.dynamic_rotate %29 by %c17_i32 dim 1 : vector<16x256xf32>, i32 -> vector<16x256xf32>
    %c0_9 = arith.constant 0 : index
    %c0_10 = arith.constant 0 : index
    %31 = vector.load %arg6[%c0_9, %c0_10] : memref<9x256xf32, #tpu.memory_space<vmem>>, vector<1x256xf32>
    %32 = vector.broadcast %31 : vector<1x256xf32> to vector<16x256xf32>
    %33 = arith.mulf %30, %32 : vector<16x256xf32>
    %c0_11 = arith.constant 0 : index
    %c0_12 = arith.constant 0 : index
    %34 = vector.load %arg4[%c0_11, %c0_12] : memref<16x9xf32, #tpu.memory_space<vmem>>, vector<16x1xf32>
    %35 = vector.broadcast %34 : vector<16x1xf32> to vector<16x256xf32>
    %36 = arith.mulf %33, %35 : vector<16x256xf32>
    %c16_i32 = arith.constant 16 : i32
    %37 = tpu.dynamic_rotate %29 by %c16_i32 dim 1 : vector<16x256xf32>, i32 -> vector<16x256xf32>
    %c1_13 = arith.constant 1 : index
    %c0_14 = arith.constant 0 : index
    %38 = vector.load %arg6[%c1_13, %c0_14] : memref<9x256xf32, #tpu.memory_space<vmem>>, vector<1x256xf32>
    %39 = vector.broadcast %38 : vector<1x256xf32> to vector<16x256xf32>
    %40 = arith.mulf %37, %39 : vector<16x256xf32>
    %c0_15 = arith.constant 0 : index
    %c1_16 = arith.constant 1 : index
    %41 = vector.load %arg4[%c0_15, %c1_16] : memref<16x9xf32, #tpu.memory_space<vmem>>, vector<16x1xf32>
    %42 = vector.broadcast %41 : vector<16x1xf32> to vector<16x256xf32>
    %43 = arith.mulf %40, %42 : vector<16x256xf32>
    %44 = arith.addf %36, %43 : vector<16x256xf32>
    %c15_i32 = arith.constant 15 : i32
    %45 = tpu.dynamic_rotate %29 by %c15_i32 dim 1 : vector<16x256xf32>, i32 -> vector<16x256xf32>
    %c2_17 = arith.constant 2 : index
    %c0_18 = arith.constant 0 : index
    %46 = vector.load %arg6[%c2_17, %c0_18] : memref<9x256xf32, #tpu.memory_space<vmem>>, vector<1x256xf32>
    %47 = vector.broadcast %46 : vector<1x256xf32> to vector<16x256xf32>
    %48 = arith.mulf %45, %47 : vector<16x256xf32>
    %c0_19 = arith.constant 0 : index
    %c2_20 = arith.constant 2 : index
    %49 = vector.load %arg4[%c0_19, %c2_20] : memref<16x9xf32, #tpu.memory_space<vmem>>, vector<16x1xf32>
    %50 = vector.broadcast %49 : vector<16x1xf32> to vector<16x256xf32>
    %51 = arith.mulf %48, %50 : vector<16x256xf32>
    %52 = arith.addf %44, %51 : vector<16x256xf32>
    %c1_i32 = arith.constant 1 : i32
    %53 = tpu.dynamic_rotate %29 by %c1_i32 dim 1 : vector<16x256xf32>, i32 -> vector<16x256xf32>
    %c3_21 = arith.constant 3 : index
    %c0_22 = arith.constant 0 : index
    %54 = vector.load %arg6[%c3_21, %c0_22] : memref<9x256xf32, #tpu.memory_space<vmem>>, vector<1x256xf32>
    %55 = vector.broadcast %54 : vector<1x256xf32> to vector<16x256xf32>
    %56 = arith.mulf %53, %55 : vector<16x256xf32>
    %c0_23 = arith.constant 0 : index
    %c3_24 = arith.constant 3 : index
    %57 = vector.load %arg4[%c0_23, %c3_24] : memref<16x9xf32, #tpu.memory_space<vmem>>, vector<16x1xf32>
    %58 = vector.broadcast %57 : vector<16x1xf32> to vector<16x256xf32>
    %59 = arith.mulf %56, %58 : vector<16x256xf32>
    %60 = arith.addf %52, %59 : vector<16x256xf32>
    %c0_25 = arith.constant 0 : index
    %c4 = arith.constant 4 : index
    %61 = vector.load %arg4[%c0_25, %c4] : memref<16x9xf32, #tpu.memory_space<vmem>>, vector<16x1xf32>
    %62 = vector.broadcast %61 : vector<16x1xf32> to vector<16x256xf32>
    %63 = arith.mulf %29, %62 : vector<16x256xf32>
    %64 = arith.addf %60, %63 : vector<16x256xf32>
    %c255_i32 = arith.constant 255 : i32
    %65 = tpu.dynamic_rotate %29 by %c255_i32 dim 1 : vector<16x256xf32>, i32 -> vector<16x256xf32>
    %c5 = arith.constant 5 : index
    %c0_26 = arith.constant 0 : index
    %66 = vector.load %arg6[%c5, %c0_26] : memref<9x256xf32, #tpu.memory_space<vmem>>, vector<1x256xf32>
    %67 = vector.broadcast %66 : vector<1x256xf32> to vector<16x256xf32>
    %68 = arith.mulf %65, %67 : vector<16x256xf32>
    %c0_27 = arith.constant 0 : index
    %c5_28 = arith.constant 5 : index
    %69 = vector.load %arg4[%c0_27, %c5_28] : memref<16x9xf32, #tpu.memory_space<vmem>>, vector<16x1xf32>
    %70 = vector.broadcast %69 : vector<16x1xf32> to vector<16x256xf32>
    %71 = arith.mulf %68, %70 : vector<16x256xf32>
    %72 = arith.addf %64, %71 : vector<16x256xf32>
    %c241_i32 = arith.constant 241 : i32
    %73 = tpu.dynamic_rotate %29 by %c241_i32 dim 1 : vector<16x256xf32>, i32 -> vector<16x256xf32>
    %c6 = arith.constant 6 : index
    %c0_29 = arith.constant 0 : index
    %74 = vector.load %arg6[%c6, %c0_29] : memref<9x256xf32, #tpu.memory_space<vmem>>, vector<1x256xf32>
    %75 = vector.broadcast %74 : vector<1x256xf32> to vector<16x256xf32>
    %76 = arith.mulf %73, %75 : vector<16x256xf32>
    %c0_30 = arith.constant 0 : index
    %c6_31 = arith.constant 6 : index
    %77 = vector.load %arg4[%c0_30, %c6_31] : memref<16x9xf32, #tpu.memory_space<vmem>>, vector<16x1xf32>
    %78 = vector.broadcast %77 : vector<16x1xf32> to vector<16x256xf32>
    %79 = arith.mulf %76, %78 : vector<16x256xf32>
    %80 = arith.addf %72, %79 : vector<16x256xf32>
    %c240_i32 = arith.constant 240 : i32
    %81 = tpu.dynamic_rotate %29 by %c240_i32 dim 1 : vector<16x256xf32>, i32 -> vector<16x256xf32>
    %c7 = arith.constant 7 : index
    %c0_32 = arith.constant 0 : index
    %82 = vector.load %arg6[%c7, %c0_32] : memref<9x256xf32, #tpu.memory_space<vmem>>, vector<1x256xf32>
    %83 = vector.broadcast %82 : vector<1x256xf32> to vector<16x256xf32>
    %84 = arith.mulf %81, %83 : vector<16x256xf32>
    %c0_33 = arith.constant 0 : index
    %c7_34 = arith.constant 7 : index
    %85 = vector.load %arg4[%c0_33, %c7_34] : memref<16x9xf32, #tpu.memory_space<vmem>>, vector<16x1xf32>
    %86 = vector.broadcast %85 : vector<16x1xf32> to vector<16x256xf32>
    %87 = arith.mulf %84, %86 : vector<16x256xf32>
    %88 = arith.addf %80, %87 : vector<16x256xf32>
    %c239_i32 = arith.constant 239 : i32
    %89 = tpu.dynamic_rotate %29 by %c239_i32 dim 1 : vector<16x256xf32>, i32 -> vector<16x256xf32>
    %c8 = arith.constant 8 : index
    %c0_35 = arith.constant 0 : index
    %90 = vector.load %arg6[%c8, %c0_35] : memref<9x256xf32, #tpu.memory_space<vmem>>, vector<1x256xf32>
    %91 = vector.broadcast %90 : vector<1x256xf32> to vector<16x256xf32>
    %92 = arith.mulf %89, %91 : vector<16x256xf32>
    %c0_36 = arith.constant 0 : index
    %c8_37 = arith.constant 8 : index
    %93 = vector.load %arg4[%c0_36, %c8_37] : memref<16x9xf32, #tpu.memory_space<vmem>>, vector<16x1xf32>
    %94 = vector.broadcast %93 : vector<16x1xf32> to vector<16x256xf32>
    %95 = arith.mulf %92, %94 : vector<16x256xf32>
    %96 = arith.addf %88, %95 : vector<16x256xf32>
    %c0_38 = arith.constant 0 : index
    %c0_39 = arith.constant 0 : index
    %97 = vector.load %arg5[%c0_38, %c0_39] : memref<16x1xf32, #tpu.memory_space<vmem>>, vector<16x1xf32>
    %98 = vector.broadcast %97 : vector<16x1xf32> to vector<16x256xf32>
    %99 = arith.addf %96, %98 : vector<16x256xf32>
    %cst_40 = arith.constant 0.000000e+00 : f32
    %100 = vector.broadcast %cst_40 : f32 to vector<16x256xf32>
    %101 = arith.maximumf %99, %100 : vector<16x256xf32>
    %102 = vector.extract_strided_slice %101 {offsets = [0, 0], sizes = [1, 256], strides = [1, 1]} : vector<16x256xf32> to vector<1x256xf32>
    %c0_41 = arith.constant 0 : index
    %c0_42 = arith.constant 0 : index
    %103 = vector.load %arg7[%c0_41, %c0_42] : memref<4x16xf32, #tpu.memory_space<vmem>>, vector<4x1xf32>
    %104 = vector.broadcast %102 : vector<1x256xf32> to vector<4x256xf32>
    %105 = vector.broadcast %103 : vector<4x1xf32> to vector<4x256xf32>
    %106 = arith.mulf %104, %105 : vector<4x256xf32>
    %107 = vector.extract_strided_slice %101 {offsets = [1, 0], sizes = [1, 256], strides = [1, 1]} : vector<16x256xf32> to vector<1x256xf32>
    %c0_43 = arith.constant 0 : index
    %c1_44 = arith.constant 1 : index
    %108 = vector.load %arg7[%c0_43, %c1_44] : memref<4x16xf32, #tpu.memory_space<vmem>>, vector<4x1xf32>
    %109 = vector.broadcast %107 : vector<1x256xf32> to vector<4x256xf32>
    %110 = vector.broadcast %108 : vector<4x1xf32> to vector<4x256xf32>
    %111 = arith.mulf %109, %110 : vector<4x256xf32>
    %112 = arith.addf %106, %111 : vector<4x256xf32>
    %113 = vector.extract_strided_slice %101 {offsets = [2, 0], sizes = [1, 256], strides = [1, 1]} : vector<16x256xf32> to vector<1x256xf32>
    %c0_45 = arith.constant 0 : index
    %c2_46 = arith.constant 2 : index
    %114 = vector.load %arg7[%c0_45, %c2_46] : memref<4x16xf32, #tpu.memory_space<vmem>>, vector<4x1xf32>
    %115 = vector.broadcast %113 : vector<1x256xf32> to vector<4x256xf32>
    %116 = vector.broadcast %114 : vector<4x1xf32> to vector<4x256xf32>
    %117 = arith.mulf %115, %116 : vector<4x256xf32>
    %118 = arith.addf %112, %117 : vector<4x256xf32>
    %119 = vector.extract_strided_slice %101 {offsets = [3, 0], sizes = [1, 256], strides = [1, 1]} : vector<16x256xf32> to vector<1x256xf32>
    %c0_47 = arith.constant 0 : index
    %c3_48 = arith.constant 3 : index
    %120 = vector.load %arg7[%c0_47, %c3_48] : memref<4x16xf32, #tpu.memory_space<vmem>>, vector<4x1xf32>
    %121 = vector.broadcast %119 : vector<1x256xf32> to vector<4x256xf32>
    %122 = vector.broadcast %120 : vector<4x1xf32> to vector<4x256xf32>
    %123 = arith.mulf %121, %122 : vector<4x256xf32>
    %124 = arith.addf %118, %123 : vector<4x256xf32>
    %125 = vector.extract_strided_slice %101 {offsets = [4, 0], sizes = [1, 256], strides = [1, 1]} : vector<16x256xf32> to vector<1x256xf32>
    %c0_49 = arith.constant 0 : index
    %c4_50 = arith.constant 4 : index
    %126 = vector.load %arg7[%c0_49, %c4_50] : memref<4x16xf32, #tpu.memory_space<vmem>>, vector<4x1xf32>
    %127 = vector.broadcast %125 : vector<1x256xf32> to vector<4x256xf32>
    %128 = vector.broadcast %126 : vector<4x1xf32> to vector<4x256xf32>
    %129 = arith.mulf %127, %128 : vector<4x256xf32>
    %130 = arith.addf %124, %129 : vector<4x256xf32>
    %131 = vector.extract_strided_slice %101 {offsets = [5, 0], sizes = [1, 256], strides = [1, 1]} : vector<16x256xf32> to vector<1x256xf32>
    %c0_51 = arith.constant 0 : index
    %c5_52 = arith.constant 5 : index
    %132 = vector.load %arg7[%c0_51, %c5_52] : memref<4x16xf32, #tpu.memory_space<vmem>>, vector<4x1xf32>
    %133 = vector.broadcast %131 : vector<1x256xf32> to vector<4x256xf32>
    %134 = vector.broadcast %132 : vector<4x1xf32> to vector<4x256xf32>
    %135 = arith.mulf %133, %134 : vector<4x256xf32>
    %136 = arith.addf %130, %135 : vector<4x256xf32>
    %137 = vector.extract_strided_slice %101 {offsets = [6, 0], sizes = [1, 256], strides = [1, 1]} : vector<16x256xf32> to vector<1x256xf32>
    %c0_53 = arith.constant 0 : index
    %c6_54 = arith.constant 6 : index
    %138 = vector.load %arg7[%c0_53, %c6_54] : memref<4x16xf32, #tpu.memory_space<vmem>>, vector<4x1xf32>
    %139 = vector.broadcast %137 : vector<1x256xf32> to vector<4x256xf32>
    %140 = vector.broadcast %138 : vector<4x1xf32> to vector<4x256xf32>
    %141 = arith.mulf %139, %140 : vector<4x256xf32>
    %142 = arith.addf %136, %141 : vector<4x256xf32>
    %143 = vector.extract_strided_slice %101 {offsets = [7, 0], sizes = [1, 256], strides = [1, 1]} : vector<16x256xf32> to vector<1x256xf32>
    %c0_55 = arith.constant 0 : index
    %c7_56 = arith.constant 7 : index
    %144 = vector.load %arg7[%c0_55, %c7_56] : memref<4x16xf32, #tpu.memory_space<vmem>>, vector<4x1xf32>
    %145 = vector.broadcast %143 : vector<1x256xf32> to vector<4x256xf32>
    %146 = vector.broadcast %144 : vector<4x1xf32> to vector<4x256xf32>
    %147 = arith.mulf %145, %146 : vector<4x256xf32>
    %148 = arith.addf %142, %147 : vector<4x256xf32>
    %149 = vector.extract_strided_slice %101 {offsets = [8, 0], sizes = [1, 256], strides = [1, 1]} : vector<16x256xf32> to vector<1x256xf32>
    %c0_57 = arith.constant 0 : index
    %c8_58 = arith.constant 8 : index
    %150 = vector.load %arg7[%c0_57, %c8_58] : memref<4x16xf32, #tpu.memory_space<vmem>>, vector<4x1xf32>
    %151 = vector.broadcast %149 : vector<1x256xf32> to vector<4x256xf32>
    %152 = vector.broadcast %150 : vector<4x1xf32> to vector<4x256xf32>
    %153 = arith.mulf %151, %152 : vector<4x256xf32>
    %154 = arith.addf %148, %153 : vector<4x256xf32>
    %155 = vector.extract_strided_slice %101 {offsets = [9, 0], sizes = [1, 256], strides = [1, 1]} : vector<16x256xf32> to vector<1x256xf32>
    %c0_59 = arith.constant 0 : index
    %c9 = arith.constant 9 : index
    %156 = vector.load %arg7[%c0_59, %c9] : memref<4x16xf32, #tpu.memory_space<vmem>>, vector<4x1xf32>
    %157 = vector.broadcast %155 : vector<1x256xf32> to vector<4x256xf32>
    %158 = vector.broadcast %156 : vector<4x1xf32> to vector<4x256xf32>
    %159 = arith.mulf %157, %158 : vector<4x256xf32>
    %160 = arith.addf %154, %159 : vector<4x256xf32>
    %161 = vector.extract_strided_slice %101 {offsets = [10, 0], sizes = [1, 256], strides = [1, 1]} : vector<16x256xf32> to vector<1x256xf32>
    %c0_60 = arith.constant 0 : index
    %c10 = arith.constant 10 : index
    %162 = vector.load %arg7[%c0_60, %c10] : memref<4x16xf32, #tpu.memory_space<vmem>>, vector<4x1xf32>
    %163 = vector.broadcast %161 : vector<1x256xf32> to vector<4x256xf32>
    %164 = vector.broadcast %162 : vector<4x1xf32> to vector<4x256xf32>
    %165 = arith.mulf %163, %164 : vector<4x256xf32>
    %166 = arith.addf %160, %165 : vector<4x256xf32>
    %167 = vector.extract_strided_slice %101 {offsets = [11, 0], sizes = [1, 256], strides = [1, 1]} : vector<16x256xf32> to vector<1x256xf32>
    %c0_61 = arith.constant 0 : index
    %c11 = arith.constant 11 : index
    %168 = vector.load %arg7[%c0_61, %c11] : memref<4x16xf32, #tpu.memory_space<vmem>>, vector<4x1xf32>
    %169 = vector.broadcast %167 : vector<1x256xf32> to vector<4x256xf32>
    %170 = vector.broadcast %168 : vector<4x1xf32> to vector<4x256xf32>
    %171 = arith.mulf %169, %170 : vector<4x256xf32>
    %172 = arith.addf %166, %171 : vector<4x256xf32>
    %173 = vector.extract_strided_slice %101 {offsets = [12, 0], sizes = [1, 256], strides = [1, 1]} : vector<16x256xf32> to vector<1x256xf32>
    %c0_62 = arith.constant 0 : index
    %c12 = arith.constant 12 : index
    %174 = vector.load %arg7[%c0_62, %c12] : memref<4x16xf32, #tpu.memory_space<vmem>>, vector<4x1xf32>
    %175 = vector.broadcast %173 : vector<1x256xf32> to vector<4x256xf32>
    %176 = vector.broadcast %174 : vector<4x1xf32> to vector<4x256xf32>
    %177 = arith.mulf %175, %176 : vector<4x256xf32>
    %178 = arith.addf %172, %177 : vector<4x256xf32>
    %179 = vector.extract_strided_slice %101 {offsets = [13, 0], sizes = [1, 256], strides = [1, 1]} : vector<16x256xf32> to vector<1x256xf32>
    %c0_63 = arith.constant 0 : index
    %c13 = arith.constant 13 : index
    %180 = vector.load %arg7[%c0_63, %c13] : memref<4x16xf32, #tpu.memory_space<vmem>>, vector<4x1xf32>
    %181 = vector.broadcast %179 : vector<1x256xf32> to vector<4x256xf32>
    %182 = vector.broadcast %180 : vector<4x1xf32> to vector<4x256xf32>
    %183 = arith.mulf %181, %182 : vector<4x256xf32>
    %184 = arith.addf %178, %183 : vector<4x256xf32>
    %185 = vector.extract_strided_slice %101 {offsets = [14, 0], sizes = [1, 256], strides = [1, 1]} : vector<16x256xf32> to vector<1x256xf32>
    %c0_64 = arith.constant 0 : index
    %c14 = arith.constant 14 : index
    %186 = vector.load %arg7[%c0_64, %c14] : memref<4x16xf32, #tpu.memory_space<vmem>>, vector<4x1xf32>
    %187 = vector.broadcast %185 : vector<1x256xf32> to vector<4x256xf32>
    %188 = vector.broadcast %186 : vector<4x1xf32> to vector<4x256xf32>
    %189 = arith.mulf %187, %188 : vector<4x256xf32>
    %190 = arith.addf %184, %189 : vector<4x256xf32>
    %191 = vector.extract_strided_slice %101 {offsets = [15, 0], sizes = [1, 256], strides = [1, 1]} : vector<16x256xf32> to vector<1x256xf32>
    %c0_65 = arith.constant 0 : index
    %c15 = arith.constant 15 : index
    %192 = vector.load %arg7[%c0_65, %c15] : memref<4x16xf32, #tpu.memory_space<vmem>>, vector<4x1xf32>
    %193 = vector.broadcast %191 : vector<1x256xf32> to vector<4x256xf32>
    %194 = vector.broadcast %192 : vector<4x1xf32> to vector<4x256xf32>
    %195 = arith.mulf %193, %194 : vector<4x256xf32>
    %196 = arith.addf %190, %195 : vector<4x256xf32>
    %c0_66 = arith.constant 0 : index
    %c0_67 = arith.constant 0 : index
    %197 = vector.load %arg8[%c0_66, %c0_67] : memref<4x1xf32, #tpu.memory_space<vmem>>, vector<4x1xf32>
    %198 = vector.broadcast %197 : vector<4x1xf32> to vector<4x256xf32>
    %199 = arith.addf %196, %198 : vector<4x256xf32>
    %200 = arith.addf %199, %1 : vector<4x256xf32>
    %cst_68 = arith.constant 0.000000e+00 : f32
    %201 = vector.broadcast %cst_68 : f32 to vector<4x256xf32>
    %202 = arith.maximumf %200, %201 : vector<4x256xf32>
    %c0_69 = arith.constant 0 : index
    %c0_70 = arith.constant 0 : index
    %c0_71 = arith.constant 0 : index
    %203 = vector.load %arg9[%c0_69, %c0_70, %c0_71] : memref<1x4x256xf32, #tpu.memory_space<vmem>>, vector<1x4x256xf32>
    %204 = vector.shape_cast %203 : vector<1x4x256xf32> to vector<4x256xf32>
    %205 = vector.shape_cast %202 : vector<4x256xf32> to vector<1x4x256xf32>
    tpu.vector_store %arg9[%c0_69, %c0_70, %c0_71], %205 {strides = array<i32>} : memref<1x4x256xf32, #tpu.memory_space<vmem>>, vector<1x4x256xf32>,
    return
  }
  func.func @transform_0(%arg0: i32) -> (i32, i32, i32) {
    %c0_i32 = arith.constant 0 : i32
    %c0_i32_0 = arith.constant 0 : i32
    %c0_i32_1 = arith.constant 0 : i32
    return %arg0, %c0_i32, %c0_i32_0 : i32, i32, i32
  }
  func.func @transform_1(%arg0: i32) -> (i32, i32) {
    %c0_i32 = arith.constant 0 : i32
    %c0_i32_0 = arith.constant 0 : i32
    %c0_i32_1 = arith.constant 0 : i32
    return %c0_i32, %c0_i32_0 : i32, i32
  }
  func.func @transform_2(%arg0: i32) -> (i32, i32) {
    %c0_i32 = arith.constant 0 : i32
    %c0_i32_0 = arith.constant 0 : i32
    %c0_i32_1 = arith.constant 0 : i32
    return %c0_i32, %c0_i32_0 : i32, i32
  }
  func.func @transform_3(%arg0: i32) -> (i32, i32) {
    %c0_i32 = arith.constant 0 : i32
    %c0_i32_0 = arith.constant 0 : i32
    %c0_i32_1 = arith.constant 0 : i32
    return %c0_i32, %c0_i32_0 : i32, i32
  }
  func.func @transform_4(%arg0: i32) -> (i32, i32) {
    %c0_i32 = arith.constant 0 : i32
    %c0_i32_0 = arith.constant 0 : i32
    %c0_i32_1 = arith.constant 0 : i32
    return %c0_i32, %c0_i32_0 : i32, i32
  }
  func.func @transform_5(%arg0: i32) -> (i32, i32) {
    %c0_i32 = arith.constant 0 : i32
    %c0_i32_0 = arith.constant 0 : i32
    %c0_i32_1 = arith.constant 0 : i32
    return %c0_i32, %c0_i32_0 : i32, i32
  }
  func.func @transform_6(%arg0: i32) -> (i32, i32) {
    %c0_i32 = arith.constant 0 : i32
    %c0_i32_0 = arith.constant 0 : i32
    %c0_i32_1 = arith.constant 0 : i32
    return %c0_i32, %c0_i32_0 : i32, i32
  }
  func.func @transform_7(%arg0: i32) -> (i32, i32) {
    %c0_i32 = arith.constant 0 : i32
    %c0_i32_0 = arith.constant 0 : i32
    %c0_i32_1 = arith.constant 0 : i32
    return %c0_i32, %c0_i32_0 : i32, i32
  }
  func.func @transform_8(%arg0: i32) -> (i32, i32, i32) {
    %c0_i32 = arith.constant 0 : i32
    %c0_i32_0 = arith.constant 0 : i32
    %c0_i32_1 = arith.constant 0 : i32
    return %arg0, %c0_i32, %c0_i32_0 : i32, i32, i32
  }
}

</mosaic_0001>

<bundles_post_ra>
// kernel: tpu_custom_call.1
= control target key start
LH: loop header
LB: loop body
LE: loop exit
PB: predicated region body
PF: predicated region fallthrough
CT: control target
= control target key end

     0   :  { %13 = vsyncpa [#allocation3], 0  ;;  %s2089_s0 = inlined_call_operand.vmem [shape: f32[2,4,256], index: 0, kind: input, shape index: {}]   ;;  %s2090_s1 = inlined_call_operand.vmem [shape: f32[16,4], index: 1, kind: input, shape index: {}]   ;;  %s2091_s2 = inlined_call_operand.vmem [shape: f32[16,1], index: 2, kind: input, shape index: {}]   ;;  %s2092_s3 = inlined_call_operand.vmem [shape: f32[16,9], index: 3, kind: input, shape index: {}]   ;;  %s2093_s4 = inlined_call_operand.vmem [shape: f32[16,1], index: 4, kind: input, shape index: {}]   ;;  %s2094_s5 = inlined_call_operand.vmem [shape: f32[9,256], index: 5, kind: input, shape index: {}]   ;;  %s2095_s6 = inlined_call_operand.vmem [shape: f32[4,16], index: 6, kind: input, shape index: {}]   ;;  %s2096_s7 = inlined_call_operand.vmem [shape: f32[4,1], index: 7, kind: input, shape index: {}]   ;;  %s2097_s8 = inlined_call_operand.hbm [shape: f32[2,4,256], index: 8, kind: output, shape index: {}]  }
   0x1   :  { %15 = vsyncpa [#allocation3 + $0x1], 0  ;;  %s1472_s27 = smov 0   ;;  %s1474_s28 = smov 0  }
   0x2   :  { %s1476_s29 = smov 0   ;;  %s1478_s30 = smov 0  }
   0x3 LB: > { %s1493_s9 = sadd.s32 4294967295, %s1400_s30   ;;  %s1216_s10 = sadd.s32 4294967294, %s1400_s30   ;;  %s1400_s30 = sphi %s1478_s30, %s2145_s30   ;;  %s1396_s29 = sphi %s1476_s29, %s2144_s29   ;;  %s1392_s28 = sphi %s1474_s28, %s2143_s28   ;;  %s1388_s27 = sphi %s1472_s27, %s2142_s27  }
   0x4   : > { %s1497_s11 = sadd.s32 1, %s1400_s30   ;;  %s201_s12 = sadd.s32 1, %s1396_s29 }
   0x5   : > { %s198_s13 = ssub.s32 %s1400_s30, %s1497_s11  ;;  %p211_p0 = scmp.ne.s32.totalorder %s1396_s29, %s1392_s28 }
   0x6   : > { %p199_p1 = scmp.eq.s32.totalorder %s198_s13, 0  ;;  %p212_p2 = scmp.eq.s32.totalorder %s1493_s9, 1 }
   0x7   : > { %p217_p3 = scmp.ne.s32.totalorder %s1392_s28, %s1388_s27  ;;  %p218_p4 = scmp.eq.s32.totalorder %s1216_s10, 1 }
   0x8   : > { %s1508_s14 = scalar_select %p199_p1, %s1396_s29, %s201_s12  }
   0x9   : > { %p1510_p5 = por %p212_p2, %p211_p0  ;;  %p1514_p6 = por %p218_p4, %p217_p3 }
   0xa   : > { %p1219_p7 = scmp.ge.s32.totalorder %s1400_s30, 1  ;;  %p265_p8 = scmp.lt.s32.totalorder %s1400_s30, 3 }
   0xc   : > { %p266_p9 = pnand %p1219_p7, %p265_p8 }
   0xe   : > { %269 = sbr.rel (%p266_p9) target bundleno = 456 (0x1c8), region = 52 }
  0x15   : > { %v306_v0 = vld [vmem:[%s2090_s1 + $0x8] sm:$0xff]  ;;  %v305_v1 = vld [vmem:[%s2090_s1] sm:$0xff]  ;;  %v1402_v2 = vmov 3   ;;  %v1403_v3 = vmov 1   ;;  %v1404_v4 = vmov 2   ;;  %v1405_v6 = vmov 5  }
  0x16   : > { %1303 = vset.pattern.permute.xlu0 %v1402_v2  ;;  %1300 = vset.pattern.permute.xlu1 %v1403_v3  ;;  %v493_v5 = vld [vmem:[%s2092_s3] sm:$0xff]  ;;  %v1406_v8 = vmov 7   ;;  %v1407_v9 = vmov 0   ;;  %v443_v10 = vld [vmem:[%s2091_s2 + $0x8] sm:$0xff]  ;;  %v1408_v14 = vmov 4   ;;  %v1409_v15 = vmov 6  }
  0x17   : > { %431 = vperm.xlu0 %1303, %v306_v0   ;;  %359 = vperm.xlu1 %1300, %v305_v1   ;;  %v442_v7 = vld [vmem:[%s2091_s2] sm:$0xff]  ;;  %v494_v11 = vld [vmem:[%s2092_s3 + $0x8] sm:$0xff]  ;;  %v1410_v16 = vmov 8   ;;  %p299_p10 = scmp.lt.s32.totalorder %s1493_s9, 1  ;;  %v308_v21 = vlaneseq  ;;  %s1411_s25 = smov 17  }
  0x18   : > { %v847_v12 = vld [vmem:[%s2093_s4] sm:$0xff]  ;;  %s1412_s26 = smov 16   ;;  %s1413_s10 = smov 15  }
  0x19   : > { %v1547_v13 = vld [vmem:[%s2095_s6] sm:$0xf]  ;;  %s300_s20 = scalar_select %p299_p10, %s1493_s9, 1  ;;  %v309_v24 = vshrl.u32 %v308_v21, 7 }
  0x1a   : > { %s1414_s12 = smov 1   ;;  %s1415_s13 = smov 127  }
  0x1b   : > { %1304 = vset.pattern.permute.xlu0 %v1404_v4  ;;  %363 = vperm.xlu1 %1300, %v306_v0   ;;  %s1235_s21 = sshll.u32 %s300_s20, 3  ;;  %v1566_v25 = vsub.s32 0, %v309_v24  ;;  %v1568_v26 = vsub.s32 1, %v309_v24  ;;  %v1573_v27 = vsub.s32 5, %v309_v24  ;;  %v1575_v28 = vsub.s32 4, %v309_v24  ;;  %s1416_s17 = smov 113  }
  0x1c   : > { %393 = vperm.xlu0 %1304, %v305_v1   ;;  %s303_s24 = scalar_lea.vmem %s2089_s0, %s1235_s21  ;;  %v1577_v29 = vsub.s32 2, %v309_v24  ;;  %v1579_v30 = vsub.s32 6, %v309_v24  ;;  %v1583_v33 = vsub.s32 3, %v309_v24  ;;  %v1585_v34 = vsub.s32 7, %v309_v24  ;;  %s1417_s18 = smov 112  }
  0x1d   : > { %2118 = vst [vmem:[#allocation5_spill] sm:$0xff] %v1573_v27  ;;  %2119 = vst [vmem:[#allocation6_spill] sm:$0xff] %v1575_v28  ;;  %v1587_v35 = vld [vmem:[%s303_s24] sm:$0xff]  ;;  %s1418_s19 = smov 111  }
  0x1e   : > { %2120 = vst [vmem:[#allocation7_spill] sm:$0xff] %v1579_v30  ;;  %2121 = vst [vmem:[#allocation8_spill] sm:$0xff] %v1583_v33  ;;  %v343_v36 = vrot.slane %v1587_v35, %v1568_v26  ;;  %v347_v37 = vrot.slane %v1587_v35, %v1573_v27  ;;  %v311_v38 = vrot.slane %v1587_v35, %v1566_v25 }
  0x1f   : > { %1301 = vset.pattern.permute.xlu1 %v1404_v4  ;;  %2122 = vst [vmem:[#allocation9_spill] sm:$0xff] %v1585_v34  ;;  %2123 = vst [vmem:[#allocation10_spill] sm:$0xff] %v1587_v35  ;;  %v315_v39 = vrot.slane %v1587_v35, %v1575_v28  ;;  %v377_v40 = vrot.slane %v1587_v35, %v1577_v29  ;;  %v381_v41 = vrot.slane %v1587_v35, %v1579_v30 }
  0x20   : > { %586 = vperm.xlu0 %1304, %v493_v5   ;;  %397 = vperm.xlu1 %1301, %v306_v0   ;;  %v411_v44 = vrot.slane %v1587_v35, %v1583_v33  ;;  %v415_v45 = vrot.slane %v1587_v35, %v1585_v34  ;;  %v353_v46 = vrot.slane %v343_v36, %v1568_v26 }
  0x21   : > { %v357_v47 = vrot.slane %v347_v37, %v1568_v26  ;;  %v321_v48 = vrot.slane %v311_v38, %v1566_v25  ;;  %v325_v49 = vrot.slane %v315_v39, %v1566_v25  ;;  %v387_v50 = vrot.slane %v377_v40, %v1577_v29 }
  0x22   : > { %v391_v51 = vrot.slane %v381_v41, %v1577_v29  ;;  %v421_v53 = vrot.slane %v411_v44, %v1583_v33  ;;  %v425_v54 = vrot.slane %v415_v45, %v1583_v33  ;;  %v1229_v33 = vld [vmem:[%s2094_s5 + $0x10] ss:$8 sm:$0x3] }
  0x24   : > { %1310 = vset.pattern.permute.xlu0 %v1405_v6  ;;  %1302 = vset.pattern.permute.xlu1 %v1402_v2 }
  0x25   : > { %694 = vperm.xlu0 %1310, %v493_v5   ;;  %427 = vperm.xlu1 %1302, %v305_v1  }
  0x29   : > { %1313 = vset.pattern.permute.xlu0 %v1406_v8  ;;  %1305 = vset.pattern.permute.xlu1 %v1407_v9 }
  0x2a   : > { %786 = vperm.xlu0 %1313, %v493_v5   ;;  %446 = vperm.xlu1 %1305, %v442_v7  }
  0x2e   : > { %1314 = vset.pattern.permute.xlu0 %v1407_v9  ;;  %451 = vperm.xlu1 %1305, %v443_v10  }
  0x2f   : > { %328 = vperm.xlu0 %1314, %v305_v1  }
  0x32   : > { %502 = vperm.xlu1 %1305, %v494_v11  }
  0x33   : > { %333 = vperm.xlu0 %1314, %v306_v0  }
  0x36   : > { %1306 = vset.pattern.permute.xlu1 %v1403_v3 }
  0x37   : > { %497 = vperm.xlu0 %1314, %v493_v5   ;;  %540 = vperm.xlu1 %1306, %v493_v5  }
  0x3b   : > { %851 = vperm.xlu0 %1314, %v847_v12   ;;  %1307 = vset.pattern.permute.xlu1 %v1404_v4 }
  0x3c   : > { %590 = vperm.xlu1 %1307, %v494_v11  }
  0x3f   : > { %1316 = vset.pattern.permute.xlu0 %v1403_v3 }
  0x40   : > { %1308 = vset.pattern.permute.xlu1 %v1402_v2  ;;  %544 = vperm.xlu0 %1316, %v494_v11  }
  0x41   : > { %632 = vperm.xlu1 %1308, %v493_v5  }
  0x44   : > { %892 = vperm.xlu0 %1316, %v1547_v13  }
  0x45   : > { %1309 = vset.pattern.permute.xlu1 %v1408_v14 }
  0x46   : > { %648 = vperm.xlu1 %1309, %v493_v5  }
  0x48   : > { %1319 = vset.pattern.permute.xlu0 %v1402_v2 }
  0x49   : > { %636 = vperm.xlu0 %1319, %v494_v11  }
  0x4a   : > { %652 = vperm.xlu1 %1309, %v494_v11  }
  0x4e   : > { %1311 = vset.pattern.permute.xlu1 %v1405_v6 }
  0x4f   : > { %698 = vperm.xlu1 %1311, %v494_v11  }
  0x53   : > { %1312 = vset.pattern.permute.xlu1 %v1409_v15 }
  0x54   : > { %740 = vperm.xlu1 %1312, %v493_v5  }
  0x58   : > { %1315 = vset.pattern.permute.xlu1 %v1410_v16 }
  0x59   : > { %832 = vperm.xlu1 %1315, %v493_v5  }
  0x5d   : > { %1317 = vset.pattern.permute.xlu1 %v1409_v15 }
  0x5e   : > { %744 = vperm.xlu1 %1317, %v494_v11  }
  0x62   : > { %1318 = vset.pattern.permute.xlu1 %v1407_v9 }
  0x63   : > { %878 = vperm.xlu1 %1318, %v1547_v13  }
  0x67   : > { %1320 = vset.pattern.permute.xlu1 %v1406_v8 }
  0x68   : > { %790 = vperm.xlu1 %1320, %v494_v11  }
  0x6c   : > { %1321 = vset.pattern.permute.xlu1 %v1404_v4 }
  0x6d   : > { %908 = vperm.xlu1 %1321, %v1547_v13  }
  0x71   : > { %1322 = vset.pattern.permute.xlu1 %v1410_v16 }
  0x72   : > { %836 = vperm.xlu1 %1322, %v494_v11  }
  0x76   : > { %1325 = vset.pattern.permute.xlu1 %v1405_v6 }
  0x96   : > { %v1559_v17 = vpop.permute.xlu0 %431  ;;  %v360_v18 = vpop.permute.xlu1 %359 }
  0x97   : > { %v366_v56 = vmul.f32 %v360_v18, %v353_v46  ;;  %v367_v57 = vmul.f32 %v360_v18, %v357_v47  ;;  %v437_v39 = vmul.f32 %v1559_v17, %v425_v54 }
  0x9a   : > { %v364_v19 = vpop.permute.xlu1 %363 }
  0x9b   : > { %v394_v20 = vpop.permute.xlu0 %393  ;;  %v368_v3 = vmul.f32 %v364_v19, %v353_v46  ;;  %v369_v4 = vmul.f32 %v364_v19, %v357_v47 }
  0x9c   : > { %v400_v60 = vmul.f32 %v394_v20, %v387_v50  ;;  %v401_v61 = vmul.f32 %v394_v20, %v391_v51  ;;  %v436_v20 = vmul.f32 %v1559_v17, %v421_v53 }
  0x9f   : > { %v1563_v22 = vpop.permute.xlu0 %586  ;;  %v398_v23 = vpop.permute.xlu1 %397 }
  0xa0   : > { %v402_v12 = vmul.f32 %v398_v23, %v387_v50  ;;  %v403_v24 = vmul.f32 %v398_v23, %v391_v51 }
  0xa4   : > { %v1581_v31 = vpop.permute.xlu0 %694  ;;  %v428_v32 = vpop.permute.xlu1 %427 }
  0xa5   : > { %v434_v62 = vmul.f32 %v428_v32, %v421_v53  ;;  %v435_v63 = vmul.f32 %v428_v32, %v425_v54 }
  0xa9   : > { %v1601_v42 = vpop.permute.xlu0 %786  ;;  %v447_v43 = vpop.permute.xlu1 %446 }
  0xad   : > { %v452_v52 = vpop.permute.xlu1 %451 }
  0xae   : > { %v329_v55 = vpop.permute.xlu0 %328 }
  0xaf   : > { %v336_v58 = vmul.f32 %v329_v55, %v321_v48  ;;  %v337_v59 = vmul.f32 %v329_v55, %v325_v49 }
  0xb1   : > { %v370_v0 = vadd.f32 %v366_v56, %v336_v58  ;;  %v371_v1 = vadd.f32 %v367_v57, %v337_v59  ;;  %v1615_v2 = vpop.permute.xlu1 %502  ;;  %v1419_v57 = vmov 10   ;;  %v1420_v58 = vmov 13  }
  0xb2   : > { %v334_v5 = vpop.permute.xlu0 %333 }
  0xb3   : > { %v404_v6 = vadd.f32 %v400_v60, %v370_v0  ;;  %v405_v7 = vadd.f32 %v401_v61, %v371_v1  ;;  %v338_v10 = vmul.f32 %v334_v5, %v321_v48  ;;  %v339_v11 = vmul.f32 %v334_v5, %v325_v49 }
  0xb4   : > { %v1421_v0 = vmov 9  }
  0xb5   : > { %v438_v18 = vadd.f32 %v434_v62, %v404_v6  ;;  %v439_v36 = vadd.f32 %v435_v63, %v405_v7  ;;  %v372_v37 = vadd.f32 %v368_v3, %v338_v10  ;;  %v373_v38 = vadd.f32 %v369_v4, %v339_v11 }
  0xb6   : > { %v1618_v32 = vpop.permute.xlu1 %540  ;;  %v1675_v61 = vpop.permute.xlu0 %497  ;;  %v1424_v7 = vmov 14   ;;  %v1425_v11 = vmov 15  }
  0xb7   : > { %v454_v40 = vadd.f32 %v447_v43, %v438_v18  ;;  %v406_v41 = vadd.f32 %v402_v12, %v372_v37  ;;  %v407_v19 = vadd.f32 %v403_v24, %v373_v38  ;;  %v455_v44 = vadd.f32 %v447_v43, %v439_v36 }
  0xb9   : > { %v458_v45 = vmax.f32 %v454_v40, 0.0  ;;  %v440_v46 = vadd.f32 %v436_v20, %v406_v41  ;;  %v441_v47 = vadd.f32 %v437_v39, %v407_v19  ;;  %v459_v49 = vmax.f32 %v455_v44, 0.0 }
  0xba   : > { %v1681_v63 = vpop.permute.xlu0 %851 }
  0xbb   : > { %v456_v48 = vadd.f32 %v452_v52, %v440_v46  ;;  %462 = vrot.lane.b32.xlu0 %v458_v45, %s1411_s25  ;;  %v1621_v23 = vpop.permute.xlu1 %590  ;;  %v457_v50 = vadd.f32 %v452_v52, %v441_v47  ;;  %v848_v52 = vld [vmem:[%s2093_s4 + $0x8] sm:$0xff]  ;;  %v1719_v46 = vand.u32 127, %v308_v21 }
  0xbd   : > { %v1623_v51 = vmax.f32 %v456_v48, 0.0  ;;  %v1628_v53 = vmax.f32 %v457_v50, 0.0  ;;  %v477_v48 = vld [vmem:[%s2094_s5] ss:$8 sm:$0x3]  ;;  %vm472_vm0 = vcmp.lt.s32.totalorder %v1719_v46, 17 }
  0xbe   : > { %v1224_v50 = vld [vmem:[%s2094_s5 + $0x2] ss:$8 sm:$0x3]  ;;  %vm517_vm1 = vcmp.lt.s32.totalorder %v1719_v46, 16  ;;  %vm563_vm2 = vcmp.lt.s32.totalorder %v1719_v46, 15  ;;  %vm609_vm3 = vcmp.lt.s32.totalorder %v1719_v46, 1 }
  0xbf   : > { %464 = vrot.lane.b32.xlu1 %v1623_v51, %s1411_s25  ;;  %466 = vrot.lane.b32.xlu0 %v459_v49, %s1411_s25  ;;  %v1686_v1 = vpop.permute.xlu0 %544  ;;  %vm671_vm4 = vcmp.lt.s32.totalorder %v1719_v46, 127  ;;  %vm717_vm5 = vcmp.lt.s32.totalorder %v1719_v46, 113  ;;  %vm763_vm6 = vcmp.lt.s32.totalorder %v1719_v46, 112  ;;  %vm809_vm7 = vcmp.lt.s32.totalorder %v1719_v46, 111 }
  0xc0   : > { %v1626_v17 = vpop.permute.xlu1 %632 }
  0xc3   : > { %468 = vrot.lane.b32.xlu1 %v1628_v53, %s1411_s25  ;;  %511 = vrot.lane.b32.xlu0 %v1623_v51, %s1412_s26  ;;  %v1691_v4 = vpop.permute.xlu0 %892 }
  0xc4   : > { %2127 = vst [vmem:[#allocation14_spill] sm:$0xff] %v1691_v4 }
  0xc5   : > { %v649_v43 = vpop.permute.xlu1 %648 }
  0xc6   : > { %v1632_v54 = vmul.f32 %v649_v43, %v458_v45  ;;  %v1634_v55 = vmul.f32 %v649_v43, %v459_v49 }
  0xc7   : > { %509 = vrot.lane.b32.xlu1 %v458_v45, %s1412_s26  ;;  %515 = vrot.lane.b32.xlu0 %v1628_v53, %s1412_s26 }
  0xc8   : > { %v1696_v6 = vpop.permute.xlu0 %636 }
  0xc9   : > { %v1653_v56 = vpop.permute.xlu1 %652 }
  0xcb   : > { %513 = vrot.lane.b32.xlu1 %v459_v49, %s1412_s26  ;;  %559 = vrot.lane.b32.xlu0 %v459_v49, %s1413_s10 }
  0xcf   : > { %555 = vrot.lane.b32.xlu1 %v458_v45, %s1413_s10  ;;  %603 = vrot.lane.b32.xlu0 %v1623_v51, %s1414_s12 }
  0xd3   : > { %557 = vrot.lane.b32.xlu1 %v1623_v51, %s1413_s10  ;;  %607 = vrot.lane.b32.xlu0 %v1628_v53, %s1414_s12 }
  0xd7   : > { %561 = vrot.lane.b32.xlu1 %v1628_v53, %s1413_s10  ;;  %663 = vrot.lane.b32.xlu0 %v458_v45, %s1415_s13  ;;  %s296_s10 = sand.u32 1, %s1392_s28  }
  0xd8   : > { %s1143_s22 = scalar_lea.sflag [#allocation3], %s296_s10 }
  0xdb   : > { %601 = vrot.lane.b32.xlu1 %v458_v45, %s1414_s12  ;;  %667 = vrot.lane.b32.xlu0 %v459_v49, %s1415_s13 }
  0xdf   : > { %605 = vrot.lane.b32.xlu1 %v459_v49, %s1414_s12  ;;  %711 = vrot.lane.b32.xlu0 %v1623_v51, %s1416_s17  ;;  %s1220_s12 = sshll.u32 %s296_s10, 3 }
  0xe3   : > { %665 = vrot.lane.b32.xlu1 %v1623_v51, %s1415_s13  ;;  %755 = vrot.lane.b32.xlu0 %v458_v45, %s1417_s18 }
  0xe7   : > { %669 = vrot.lane.b32.xlu1 %v1628_v53, %s1415_s13  ;;  %801 = vrot.lane.b32.xlu0 %v458_v45, %s1418_s19  ;;  %s1236_s13 = sshll.u32 %s1493_s9, 7  ;;  %s1426_s9 = smov [#allocation2]  }
  0xe8   : > { %s2047_s21 = scalar_lea.hbm %s2097_s8, %s1236_s13  ;;  %s1342_s24 = sshll.u32 %s1426_s9, 4  ;;  %s1343_s24 = int_to_ptr.vmem [resolvable:$false] %s1342_s24 }
  0xe9   : > { %s1344_s25 = scalar_lea.vmem %s1343_s24, 256 }
  0xeb   : > { %709 = vrot.lane.b32.xlu1 %v458_v45, %s1416_s17  ;;  %715 = vrot.lane.b32.xlu0 %v1628_v53, %s1416_s17 }
  0xef   : > { %713 = vrot.lane.b32.xlu1 %v459_v49, %s1416_s17  ;;  %924 = vperm.xlu0 %1319, %v1547_v13   ;;  %s298_s17 = scalar_lea.vmem [#allocation2], %s1220_s12 }
  0xf3   : > { %759 = vrot.lane.b32.xlu1 %v459_v49, %s1417_s18  ;;  %1323 = vset.pattern.permute.xlu0 %v1408_v14  ;;  %v1658_v14 = vpop.permute.xlu1 %698 }
  0xf4   : > { %940 = vperm.xlu0 %1323, %v1547_v13  }
  0xf7   : > { %805 = vrot.lane.b32.xlu1 %v459_v49, %s1418_s19  ;;  %v1663_v59 = vpop.permute.xlu1 %740  ;;  %v1223_v49 = vld [vmem:[%s2094_s5 + $0x1] ss:$8 sm:$0x3] }
  0xf8   : > { %1324 = vset.pattern.permute.xlu0 %v1407_v9 }
  0xf9   : > { %856 = vperm.xlu0 %1324, %v848_v52   ;;  %v1734_v52 = vrot.slane %v477_v48, %v1566_v25 }
  0xfb   : > { %757 = vrot.lane.b32.xlu1 %v1623_v51, %s1417_s18  ;;  %v1671_v60 = vpop.permute.xlu1 %832 }
  0xfd   : > { %1327 = vset.pattern.permute.xlu0 %v1406_v8  ;;  %v1123_v8 = vld [vmem:[%s2096_s7] sm:$0xf] }
  0xfe   : > { %988 = vperm.xlu0 %1327, %v1547_v13  }
  0xff   : > { %761 = vrot.lane.b32.xlu1 %v1628_v53, %s1417_s18  ;;  %v1677_v62 = vpop.permute.xlu1 %744  ;;  %s1157_s18 = sshll.u32 %s298_s17, 4  ;;  %s2049_s18 = int_to_ptr.vmem [resolvable:$true] %s1157_s18 }
 0x100   : > { %2124 = vst [vmem:[#allocation11_spill] sm:$0xff] %v1677_v62  ;;  %s1338_s23 = scalar_lea.vmem %s2049_s18, 128  ;;  %p1345_p0 = scmp.lt.s32.totalorder %s2049_s18, %s1343_s24 }
 0x101   : > { %p1339_p11 = scmp.ne.s32.totalorder %s2049_s18, %s1338_s23  ;;  %p1346_p1 = scmp.lt.s32.totalorder %s1344_s25, %s1338_s23 }
 0x102   : > { %1330 = vset.pattern.permute.xlu0 %v1419_v57  ;;  %v1737_v57 = vrot.slane %v477_v48, %v1568_v26 }
 0x103   : > { %803 = vrot.lane.b32.xlu1 %v1623_v51, %s1418_s19  ;;  %1036 = vperm.xlu0 %1330, %v1547_v13   ;;  %p1340_p12 = pnand %p1339_p11, %p1510_p5  ;;  %p1347_p2 = por %p1346_p1, %p1345_p0 }
 0x105   : > { %p1341_p13 = pneg %p1340_p12 }
 0x107   : > { %807 = vrot.lane.b32.xlu1 %v1628_v53, %s1418_s19  ;;  %1333 = vset.pattern.permute.xlu0 %v1420_v58  ;;  %p1348_p3 = pnand %p1347_p2, %p1341_p13 }
 0x108   : > { %1084 = vperm.xlu0 %1333, %v1547_v13  }
 0x10b   : > { %956 = vperm.xlu1 %1325, %v1547_v13  }
 0x10c   : > { %1336 = vset.pattern.permute.xlu0 %v1407_v9  ;;  %v1683_v9 = vpop.permute.xlu1 %878 }
 0x10d   : > { %1126 = vperm.xlu0 %1336, %v1123_v8   ;;  %2125 = vst [vmem:[#allocation12_spill] sm:$0xff] %v1683_v9 }
 0x10f   : > { %1326 = vset.pattern.permute.xlu1 %v1409_v15  ;;  %v1422_v15 = vmov 11  }
 0x110   : > { %972 = vperm.xlu1 %1326, %v1547_v13   ;;  %v1689_v3 = vpop.permute.xlu1 %790 }
 0x111   : > { %2126 = vst [vmem:[#allocation13_spill] sm:$0xff] %v1689_v3 }
 0x114   : > { %1328 = vset.pattern.permute.xlu1 %v1410_v16  ;;  %v1423_v16 = vmov 12   ;;  %v1694_v5 = vpop.permute.xlu1 %908 }
 0x115   : > { %1004 = vperm.xlu1 %1328, %v1547_v13   ;;  %2128 = vst [vmem:[#allocation15_spill] sm:$0xff] %v1694_v5 }
 0x118   : > { %v1699_v10 = vpop.permute.xlu1 %836 }
 0x119   : > { %1329 = vset.pattern.permute.xlu1 %v1421_v0  ;;  %2129 = vst [vmem:[#allocation16_spill] sm:$0xff] %v1699_v10  ;;  %v528_v0 = vrot.slane %v1223_v49, %v1566_v25  ;;  %v1226_v10 = vld [vmem:[%s2094_s5 + $0x5] ss:$8 sm:$0x3] }
 0x11a   : > { %1020 = vperm.xlu1 %1329, %v1547_v13  }
 0x11e   : > { %1331 = vset.pattern.permute.xlu1 %v1422_v15  ;;  %v1745_v15 = vrot.slane %v1223_v49, %v1568_v26 }
 0x11f   : > { %1052 = vperm.xlu1 %1331, %v1547_v13  }
 0x123   : > { %1332 = vset.pattern.permute.xlu1 %v1423_v16  ;;  %v1748_v16 = vrot.slane %v1224_v50, %v1566_v25 }
 0x124   : > { %1068 = vperm.xlu1 %1332, %v1547_v13  }
 0x128   : > { %1334 = vset.pattern.permute.xlu1 %v1424_v7  ;;  %v1751_v7 = vrot.slane %v1224_v50, %v1568_v26 }
 0x129   : > { %1100 = vperm.xlu1 %1334, %v1547_v13  }
 0x12d   : > { %1335 = vset.pattern.permute.xlu1 %v1425_v11  ;;  %v463_v12 = vpop.permute.xlu0 %462  ;;  %v1225_v11 = vld [vmem:[%s2094_s5 + $0x3] ss:$8 sm:$0x3] }
 0x12e   : > { %1116 = vperm.xlu1 %1335, %v1547_v13   ;;  %v1769_v30 = vrot.slane %v1225_v11, %v1566_v25  ;;  %v1772_v27 = vrot.slane %v1225_v11, %v1568_v26 }
 0x131   : > { %v1702_v24 = vpop.permute.xlu1 %464  ;;  %v467_v18 = vpop.permute.xlu0 %466 }
 0x132   : > { %v473_v48 = vsel %vm472_vm0, %v463_v12, %v467_v18 }
 0x135   : > { %v1704_v36 = vpop.permute.xlu1 %468  ;;  %v1706_v37 = vpop.permute.xlu0 %511 }
 0x139   : > { %v510_v38 = vpop.permute.xlu1 %509  ;;  %v1708_v20 = vpop.permute.xlu0 %515 }
 0x13d   : > { %v514_v39 = vpop.permute.xlu1 %513  ;;  %v560_v40 = vpop.permute.xlu0 %559 }
 0x13e   : > { %v518_v58 = vsel %vm517_vm1, %v510_v38, %v514_v39  ;;  %v520_v8 = vsel %vm517_vm1, %v514_v39, %v510_v38  ;;  %v475_v38 = vsel %vm472_vm0, %v467_v18, %v463_v12 }
 0x13f   : > { %v535_v35 = vmul.f32 %v528_v0, %v520_v8  ;;  %v536_v50 = vmul.f32 %v1745_v15, %v518_v58 }
 0x141   : > { %v556_v41 = vpop.permute.xlu1 %555  ;;  %v1710_v19 = vpop.permute.xlu0 %603  ;;  %v547_v3 = vmul.f32 %v1618_v32, %v535_v35  ;;  %v548_v62 = vmul.f32 %v1618_v32, %v536_v50 }
 0x142   : > { %v564_v39 = vsel %vm563_vm2, %v556_v41, %v560_v40  ;;  %v566_v49 = vsel %vm563_vm2, %v560_v40, %v556_v41  ;;  %v489_v40 = vmul.f32 %v1734_v52, %v475_v38  ;;  %v490_v41 = vmul.f32 %v1737_v57, %v473_v48  ;;  %v1227_v48 = vld [vmem:[%s2094_s5 + $0x6] ss:$8 sm:$0x3] }
 0x143   : > { %v581_v58 = vmul.f32 %v1748_v16, %v566_v49  ;;  %v582_v8 = vmul.f32 %v1751_v7, %v564_v39  ;;  %v1796_v38 = vrot.slane %v1226_v10, %v1566_v25  ;;  %v1799_v39 = vrot.slane %v1226_v10, %v1568_v26 }
 0x144   : > { %v505_v35 = vmul.f32 %v1675_v61, %v489_v40  ;;  %v506_v32 = vmul.f32 %v1675_v61, %v490_v41  ;;  %v521_v10 = vsel %vm517_vm1, %v1708_v20, %v1706_v37  ;;  %v1818_v61 = vrot.slane %v1227_v48, %v1566_v25 }
 0x145   : > { %v1712_v44 = vpop.permute.xlu1 %557  ;;  %v1716_v13 = vpop.permute.xlu0 %607  ;;  %v593_v49 = vmul.f32 %v1563_v22, %v581_v58  ;;  %v594_v50 = vmul.f32 %v1563_v22, %v582_v8  ;;  %v1828_v4 = vrot.slane %v1227_v48, %v1568_v26  ;;  %v474_v48 = vsel %vm472_vm0, %v1702_v24, %v1704_v36 }
 0x146   : > { %v551_v22 = vadd.f32 %v547_v3, %v505_v35  ;;  %v552_v40 = vadd.f32 %v548_v62, %v506_v32  ;;  %v537_v32 = vmul.f32 %v528_v0, %v521_v10 }
 0x149   : > { %v1714_v45 = vpop.permute.xlu1 %561  ;;  %v664_v21 = vpop.permute.xlu0 %663 }
 0x14d   : > { %v602_v47 = vpop.permute.xlu1 %601  ;;  %v668_v11 = vpop.permute.xlu0 %667 }
 0x14e   : > { %v672_v3 = vsel %vm671_vm4, %v664_v21, %v668_v11 }
 0x151   : > { %v606_v43 = vpop.permute.xlu1 %605  ;;  %v1822_v8 = vpop.permute.xlu0 %711 }
 0x152   : > { %v610_v12 = vsel %vm609_vm3, %v602_v47, %v606_v43  ;;  %v612_v18 = vsel %vm609_vm3, %v606_v43, %v602_v47 }
 0x153   : > { %v627_v28 = vmul.f32 %v1769_v30, %v612_v18  ;;  %v628_v47 = vmul.f32 %v1772_v27, %v610_v12  ;;  %v1228_v12 = vld [vmem:[%s2094_s5 + $0x7] ss:$8 sm:$0x3]  ;;  %v476_v18 = vsel %vm472_vm0, %v1704_v36, %v1702_v24  ;;  %v689_v24 = vmul.f32 %v1796_v38, %v672_v3 }
 0x154   : > { %v1832_v9 = vrot.slane %v1228_v12, %v1566_v25  ;;  %v1835_v62 = vrot.slane %v1228_v12, %v1568_v26  ;;  %v491_v35 = vmul.f32 %v1734_v52, %v476_v18  ;;  %v1848_v12 = vrot.slane %v1229_v33, %v1566_v25 }
 0x155   : > { %v1766_v34 = vpop.permute.xlu1 %665  ;;  %v639_v41 = vmul.f32 %v1626_v17, %v627_v28  ;;  %v640_v58 = vmul.f32 %v1626_v17, %v628_v47  ;;  %v597_v28 = vadd.f32 %v593_v49, %v551_v22  ;;  %v598_v17 = vadd.f32 %v594_v50, %v552_v40 }
 0x156   : > { %v674_v47 = vsel %vm671_vm4, %v668_v11, %v664_v21  ;;  %v519_v49 = vsel %vm517_vm1, %v1706_v37, %v1708_v20  ;;  %v567_v21 = vsel %vm563_vm2, %v1714_v45, %v1712_v44  ;;  %v492_v37 = vmul.f32 %v1737_v57, %v474_v48  ;;  %v756_v20 = vpop.permute.xlu0 %755 }
 0x157   : > { %v643_v11 = vadd.f32 %v639_v41, %v597_v28  ;;  %v644_v50 = vadd.f32 %v640_v58, %v598_v17  ;;  %v690_v36 = vmul.f32 %v1799_v39, %v674_v47  ;;  %v1868_v40 = vrot.slane %v1229_v33, %v1568_v26 }
 0x158   : > { %v507_v41 = vmul.f32 %v1615_v2, %v491_v35  ;;  %v538_v58 = vmul.f32 %v1745_v15, %v519_v49  ;;  %v549_v28 = vmul.f32 %v1686_v1, %v537_v32  ;;  %v583_v17 = vmul.f32 %v1748_v16, %v567_v21 }
 0x159   : > { %v1789_v43 = vpop.permute.xlu1 %669  ;;  %v565_v57 = vsel %vm563_vm2, %v1712_v44, %v1714_v45  ;;  %v659_v33 = vadd.f32 %v1632_v54, %v643_v11  ;;  %v660_v3 = vadd.f32 %v1634_v55, %v644_v50  ;;  %v701_v15 = vmul.f32 %v1581_v31, %v689_v24 }
 0x15a   : > { %v702_v48 = vmul.f32 %v1581_v31, %v690_v36  ;;  %v550_v55 = vmul.f32 %v1686_v1, %v538_v58  ;;  %v553_v45 = vadd.f32 %v549_v28, %v507_v41  ;;  %v584_v21 = vmul.f32 %v1751_v7, %v565_v57  ;;  %v802_v11 = vpop.permute.xlu0 %801 }
 0x15b   : > { %v595_v31 = vmul.f32 %v1621_v23, %v583_v17  ;;  %v705_v50 = vadd.f32 %v701_v15, %v659_v33  ;;  %v508_v41 = vmul.f32 %v1615_v2, %v492_v37  ;;  %v673_v2 = vsel %vm671_vm4, %v1766_v34, %v1789_v43 }
 0x15c   : > { %v596_v58 = vmul.f32 %v1621_v23, %v584_v21 }
 0x15d   : > { %v710_v5 = vpop.permute.xlu1 %709  ;;  %v599_v28 = vadd.f32 %v595_v31, %v553_v45  ;;  %v554_v57 = vadd.f32 %v550_v55, %v508_v41  ;;  %v2133_v41 = vld [vmem:[#allocation15_spill] sm:$0xff] }
 0x161   : > { %v714_v22 = vpop.permute.xlu1 %713 }
 0x162   : > { %v718_v52 = vsel %vm717_vm5, %v710_v5, %v714_v22  ;;  %v720_v0 = vsel %vm717_vm5, %v714_v22, %v710_v5  ;;  %v613_v5 = vsel %vm609_vm3, %v1716_v13, %v1710_v19  ;;  %v706_v22 = vadd.f32 %v702_v48, %v660_v3 }
 0x163   : > { %v735_v18 = vmul.f32 %v1818_v61, %v718_v52  ;;  %v736_v10 = vmul.f32 %v1828_v4, %v720_v0  ;;  %v629_v1 = vmul.f32 %v1769_v30, %v613_v5 }
 0x165   : > { %v760_v47 = vpop.permute.xlu1 %759  ;;  %v747_v32 = vmul.f32 %v1663_v59, %v735_v18  ;;  %v748_v49 = vmul.f32 %v1663_v59, %v736_v10  ;;  %v611_v59 = vsel %vm609_vm3, %v1710_v19, %v1716_v13  ;;  %v641_v3 = vmul.f32 %v1696_v6, %v629_v1  ;;  %v2132_v1 = vld [vmem:[#allocation8_spill] sm:$0xff] }
 0x166   : > { %v764_v16 = vsel %vm763_vm6, %v756_v20, %v760_v47  ;;  %v766_v35 = vsel %vm763_vm6, %v760_v47, %v756_v20  ;;  %v630_v33 = vmul.f32 %v1772_v27, %v611_v59  ;;  %v600_v47 = vadd.f32 %v596_v58, %v554_v57 }
 0x167   : > { %v781_v44 = vmul.f32 %v1832_v9, %v764_v16  ;;  %v782_v54 = vmul.f32 %v1835_v62, %v766_v35  ;;  %v751_v20 = vadd.f32 %v747_v32, %v705_v50  ;;  %v752_v18 = vadd.f32 %v748_v49, %v706_v22 }
 0x168   : > { %v645_v15 = vadd.f32 %v641_v3, %v599_v28  ;;  %v657_v35 = vmul.f32 %v1653_v56, %v1623_v51  ;;  %v642_v32 = vmul.f32 %v1696_v6, %v630_v33  ;;  %v691_v49 = vmul.f32 %v1796_v38, %v673_v2  ;;  %v2134_v28 = vld [vmem:[#allocation6_spill] sm:$0xff] }
 0x169   : > { %v793_v24 = vmul.f32 %v1601_v42, %v781_v44  ;;  %v794_v36 = vmul.f32 %v1601_v42, %v782_v54  ;;  %v806_v52 = vpop.permute.xlu1 %805  ;;  %v716_v44 = vpop.permute.xlu0 %715 }
 0x16a   : > { %v810_v7 = vsel %vm809_vm7, %v802_v11, %v806_v52  ;;  %v812_v0 = vsel %vm809_vm7, %v806_v52, %v802_v11  ;;  %v661_v45 = vadd.f32 %v657_v35, %v645_v15  ;;  %v719_v51 = vsel %vm717_vm5, %v1822_v8, %v716_v44  ;;  %v2131_v52 = vld [vmem:[#allocation14_spill] sm:$0xff] }
 0x16b   : > { %v827_v10 = vmul.f32 %v1848_v12, %v810_v7  ;;  %v828_v42 = vmul.f32 %v1868_v40, %v812_v0  ;;  %v797_v19 = vadd.f32 %v793_v24, %v751_v20  ;;  %v798_v13 = vadd.f32 %v794_v36, %v752_v18  ;;  %v2130_v24 = vld [vmem:[#allocation12_spill] sm:$0xff] }
 0x16c   : > { %v721_v22 = vsel %vm717_vm5, %v716_v44, %v1822_v8  ;;  %v737_v0 = vmul.f32 %v1818_v61, %v719_v51 }
 0x16d   : > { %v839_v30 = vmul.f32 %v1671_v60, %v827_v10  ;;  %v840_v17 = vmul.f32 %v1671_v60, %v828_v42  ;;  %v758_v5 = vpop.permute.xlu1 %757  ;;  %v675_v60 = vsel %vm671_vm4, %v1789_v43, %v1766_v34  ;;  %v658_v34 = vmul.f32 %v1653_v56, %v1628_v53 }
 0x16e   : > { %v646_v43 = vadd.f32 %v642_v32, %v600_v47  ;;  %v703_v53 = vmul.f32 %v1658_v14, %v691_v49  ;;  %v925_v56 = vpop.permute.xlu0 %924  ;;  %v738_v2 = vmul.f32 %v1828_v4, %v721_v22 }
 0x16f   : > { %v843_v37 = vadd.f32 %v839_v30, %v797_v19  ;;  %v844_v23 = vadd.f32 %v840_v17, %v798_v13 }
 0x170   : > { %v662_v32 = vadd.f32 %v658_v34, %v646_v43  ;;  %v2137_v43 = vld [vmem:[#allocation16_spill] sm:$0xff] }
 0x171   : > { %v859_v48 = vadd.f32 %v1681_v63, %v843_v37  ;;  %v860_v27 = vadd.f32 %v1681_v63, %v844_v23  ;;  %v762_v16 = vpop.permute.xlu1 %761  ;;  %v692_v63 = vmul.f32 %v1799_v39, %v675_v60 }
 0x172   : > { %v765_v8 = vsel %vm763_vm6, %v758_v5, %v762_v16  ;;  %v767_v17 = vsel %vm763_vm6, %v762_v16, %v758_v5 }
 0x173   : > { %v1930_v54 = vmax.f32 %v859_v48, 0.0  ;;  %v1932_v55 = vmax.f32 %v860_v27, 0.0  ;;  %v941_v57 = vpop.permute.xlu0 %940  ;;  %v704_v3 = vmul.f32 %v1658_v14, %v692_v63  ;;  %v783_v5 = vmul.f32 %v1832_v9, %v765_v8  ;;  %v2135_v14 = vld [vmem:[#allocation11_spill] sm:$0xff] }
 0x174   : > { %v784_v16 = vmul.f32 %v1835_v62, %v767_v17  ;;  %v749_v49 = vmul.f32 %v2135_v14, %v737_v0  ;;  %v750_v63 = vmul.f32 %v2135_v14, %v738_v2  ;;  %v2140_v17 = vld [vmem:[#allocation9_spill] sm:$0xff] }
 0x175   : > { %v875_v6 = vrot.slane %v1932_v55, %v1566_v25  ;;  %v890_v38 = vrot.slane %v1932_v55, %v1568_v26  ;;  %v906_v21 = vrot.slane %v1932_v55, %v1577_v29  ;;  %v804_v31 = vpop.permute.xlu1 %803  ;;  %v871_v39 = vrot.slane %v1930_v54, %v1566_v25 }
 0x176   : > { %v886_v11 = vrot.slane %v1930_v54, %v1568_v26  ;;  %v902_v50 = vrot.slane %v1930_v54, %v1577_v29  ;;  %v922_v7 = vrot.slane %v1932_v55, %v2132_v1  ;;  %v918_v10 = vrot.slane %v1930_v54, %v2132_v1 }
 0x177   : > { %v882_v36 = vmul.f32 %v2130_v24, %v875_v6  ;;  %v896_v59 = vmul.f32 %v2131_v52, %v890_v38  ;;  %v881_v20 = vmul.f32 %v2130_v24, %v871_v39  ;;  %v912_v58 = vmul.f32 %v2133_v41, %v906_v21 }
 0x178   : > { %v895_v18 = vmul.f32 %v2131_v52, %v886_v11  ;;  %v938_v19 = vrot.slane %v1932_v55, %v2134_v28  ;;  %v911_v61 = vmul.f32 %v2133_v41, %v902_v50  ;;  %v934_v33 = vrot.slane %v1930_v54, %v2134_v28  ;;  %v2139_v41 = vld [vmem:[#allocation7_spill] sm:$0xff] }
 0x179   : > { %v898_v42 = vadd.f32 %v896_v59, %v882_v36  ;;  %v808_v13 = vpop.permute.xlu1 %807  ;;  %v928_v23 = vmul.f32 %v925_v56, %v922_v7  ;;  %v927_v15 = vmul.f32 %v925_v56, %v918_v10  ;;  %v707_v21 = vadd.f32 %v703_v53, %v661_v45  ;;  %v2136_v56 = vld [vmem:[#allocation13_spill] sm:$0xff] }
 0x17a   : > { %v897_v30 = vadd.f32 %v895_v18, %v881_v20  ;;  %v811_v60 = vsel %vm809_vm7, %v804_v31, %v808_v13  ;;  %v813_v48 = vsel %vm809_vm7, %v808_v13, %v804_v31  ;;  %v944_v35 = vmul.f32 %v941_v57, %v938_v19  ;;  %v2138_v59 = vld [vmem:[#allocation5_spill] sm:$0xff] }
 0x17b   : > { %v914_v37 = vadd.f32 %v912_v58, %v898_v42  ;;  %v943_v44 = vmul.f32 %v941_v57, %v934_v33  ;;  %v829_v6 = vmul.f32 %v1848_v12, %v811_v60  ;;  %v830_v38 = vmul.f32 %v1868_v40, %v813_v48  ;;  %v857_v12 = vpop.permute.xlu0 %856 }
 0x17c   : > { %v913_v47 = vadd.f32 %v911_v61, %v897_v30  ;;  %v708_v31 = vadd.f32 %v704_v3, %v662_v32  ;;  %v795_v9 = vmul.f32 %v2136_v56, %v783_v5  ;;  %v796_v62 = vmul.f32 %v2136_v56, %v784_v16 }
 0x17d   : > { %v930_v27 = vadd.f32 %v928_v23, %v914_v37  ;;  %v753_v39 = vadd.f32 %v749_v49, %v707_v21  ;;  %v841_v11 = vmul.f32 %v2137_v43, %v829_v6  ;;  %v842_v50 = vmul.f32 %v2137_v43, %v830_v38 }
 0x17e   : > { %v929_v4 = vadd.f32 %v927_v15, %v913_v47  ;;  %v754_v34 = vadd.f32 %v750_v63, %v708_v31  ;;  %v950_v40 = vrot.slane %v1930_v54, %v2138_v59  ;;  %v954_v45 = vrot.slane %v1932_v55, %v2138_v59 }
 0x17f   : > { %v946_v51 = vadd.f32 %v944_v35, %v930_v27  ;;  %v799_v22 = vadd.f32 %v795_v9, %v753_v39  ;;  %v966_v58 = vrot.slane %v1930_v54, %v2139_v41  ;;  %v970_v8 = vrot.slane %v1932_v55, %v2139_v41  ;;  %v989_v30 = vpop.permute.xlu0 %988 }
 0x180   : > { %v945_v46 = vadd.f32 %v943_v44, %v929_v4  ;;  %v800_v24 = vadd.f32 %v796_v62, %v754_v34  ;;  %v986_v57 = vrot.slane %v1932_v55, %v2140_v17  ;;  %v982_v33 = vrot.slane %v1930_v54, %v2140_v17 }
 0x181   : > { %v845_v36 = vadd.f32 %v841_v11, %v799_v22 }
 0x182   : > { %v846_v52 = vadd.f32 %v842_v50, %v800_v24  ;;  %v991_v37 = vmul.f32 %v989_v30, %v982_v33  ;;  %v992_v23 = vmul.f32 %v989_v30, %v986_v57 }
 0x183   : > { %v861_v7 = vadd.f32 %v857_v12, %v845_v36  ;;  %v1037_v6 = vpop.permute.xlu0 %1036 }
 0x184   : > { %v862_v0 = vadd.f32 %v857_v12, %v846_v52 }
 0x185   : > { %v1999_v19 = vmax.f32 %v861_v7, 0.0 }
 0x186   : > { %v2001_v13 = vmax.f32 %v862_v0, 0.0 }
 0x187   : > { %v998_v60 = vrot.slane %v1999_v19, %v1566_v25  ;;  %v1030_v54 = vrot.slane %v1999_v19, %v1577_v29  ;;  %v1014_v4 = vrot.slane %v1999_v19, %v1568_v26  ;;  %v1046_v56 = vrot.slane %v1999_v19, %v2132_v1 }
 0x188   : > { %v1002_v48 = vrot.slane %v2001_v13, %v1566_v25  ;;  %v1034_v49 = vrot.slane %v2001_v13, %v1577_v29  ;;  %v1018_v44 = vrot.slane %v2001_v13, %v1568_v26  ;;  %v1050_v29 = vrot.slane %v2001_v13, %v2132_v1  ;;  %v1085_v1 = vpop.permute.xlu0 %1084 }
 0x189   : > { %v1039_v38 = vmul.f32 %v1037_v6, %v1030_v54  ;;  %v1078_v50 = vrot.slane %v1999_v19, %v2138_v59  ;;  %v1082_v22 = vrot.slane %v2001_v13, %v2138_v59  ;;  %v1062_v24 = vrot.slane %v1999_v19, %v2134_v28 }
 0x18a   : > { %v957_v53 = vpop.permute.xlu1 %956  ;;  %v1066_v36 = vrot.slane %v2001_v13, %v2134_v28  ;;  %v1098_v59 = vrot.slane %v2001_v13, %v2139_v41  ;;  %v1114_v57 = vrot.slane %v2001_v13, %v2140_v17 }
 0x18b   : > { %v959_v20 = vmul.f32 %v957_v53, %v950_v40  ;;  %v960_v18 = vmul.f32 %v957_v53, %v954_v45  ;;  %v1087_v45 = vmul.f32 %v1085_v1, %v1078_v50  ;;  %v1088_v53 = vmul.f32 %v1085_v1, %v1082_v22 }
 0x18d   : > { %v961_v10 = vadd.f32 %v959_v20, %v945_v46  ;;  %v962_v42 = vadd.f32 %v960_v18, %v946_v51  ;;  %v1040_v46 = vmul.f32 %v1037_v6, %v1034_v49  ;;  %v1094_v20 = vrot.slane %v1999_v19, %v2139_v41 }
 0x18f   : > { %v973_v61 = vpop.permute.xlu1 %972 }
 0x190   : > { %v975_v3 = vmul.f32 %v973_v61, %v966_v58  ;;  %v976_v2 = vmul.f32 %v973_v61, %v970_v8  ;;  %v1110_v61 = vrot.slane %v1999_v19, %v2140_v17 }
 0x192   : > { %v977_v47 = vadd.f32 %v975_v3, %v961_v10  ;;  %v978_v15 = vadd.f32 %v976_v2, %v962_v42 }
 0x194   : > { %v1005_v27 = vpop.permute.xlu1 %1004  ;;  %v993_v5 = vadd.f32 %v991_v37, %v977_v47  ;;  %v994_v16 = vadd.f32 %v992_v23, %v978_v15  ;;  %v1127_v37 = vpop.permute.xlu0 %1126  ;;  %v2141_v23 = vld [vmem:[#allocation10_spill] sm:$0xff] }
 0x195   : > { %v1007_v35 = vmul.f32 %v1005_v27, %v998_v60  ;;  %v1008_v55 = vmul.f32 %v1005_v27, %v1002_v48  ;;  %v1131_v47 = vcombine.high %v2141_v23, %v2141_v23 }
 0x197   : > { %v1009_v32 = vadd.f32 %v1007_v35, %v993_v5  ;;  %v1010_v14 = vadd.f32 %v1008_v55, %v994_v16 }
 0x199   : > { %v1021_v25 = vpop.permute.xlu1 %1020 }
 0x19a   : > { %v1023_v63 = vmul.f32 %v1021_v25, %v1014_v4  ;;  %v1024_v51 = vmul.f32 %v1021_v25, %v1018_v44 }
 0x19c   : > { %v1025_v21 = vadd.f32 %v1023_v63, %v1009_v32  ;;  %v1026_v31 = vadd.f32 %v1024_v51, %v1010_v14 }
 0x19e   : > { %v1053_v9 = vpop.permute.xlu1 %1052  ;;  %v1041_v62 = vadd.f32 %v1039_v38, %v1025_v21  ;;  %v1042_v39 = vadd.f32 %v1040_v46, %v1026_v31 }
 0x19f   : > { %v1055_v34 = vmul.f32 %v1053_v9, %v1046_v56  ;;  %v1056_v43 = vmul.f32 %v1053_v9, %v1050_v29 }
 0x1a1   : > { %v1057_v26 = vadd.f32 %v1055_v34, %v1041_v62  ;;  %v1058_v11 = vadd.f32 %v1056_v43, %v1042_v39 }
 0x1a3   : > { %v1069_v52 = vpop.permute.xlu1 %1068 }
 0x1a4   : > { %v1071_v12 = vmul.f32 %v1069_v52, %v1062_v24  ;;  %v1072_v40 = vmul.f32 %v1069_v52, %v1066_v36 }
 0x1a6   : > { %v1073_v7 = vadd.f32 %v1071_v12, %v1057_v26  ;;  %v1074_v0 = vadd.f32 %v1072_v40, %v1058_v11 }
 0x1a8   : > { %v1101_v18 = vpop.permute.xlu1 %1100  ;;  %v1089_v10 = vadd.f32 %v1087_v45, %v1073_v7  ;;  %v1090_v42 = vadd.f32 %v1088_v53, %v1074_v0 }
 0x1a9   : > { %v1103_v58 = vmul.f32 %v1101_v18, %v1094_v20  ;;  %v1104_v28 = vmul.f32 %v1101_v18, %v1098_v59 }
 0x1ab   : > { %v1105_v8 = vadd.f32 %v1103_v58, %v1089_v10  ;;  %v1106_v30 = vadd.f32 %v1104_v28, %v1090_v42 }
 0x1ad   : > { %v1117_v33 = vpop.permute.xlu1 %1116 }
 0x1ae   : > { %v1119_v3 = vmul.f32 %v1117_v33, %v1110_v61  ;;  %v1120_v2 = vmul.f32 %v1117_v33, %v1114_v57 }
 0x1b0   : > { %v1122_v41 = vadd.f32 %v1120_v2, %v1106_v30  ;;  %v1121_v15 = vadd.f32 %v1119_v3, %v1105_v8 }
 0x1b2   : > { %v1129_v60 = vadd.f32 %v1127_v37, %v1121_v15  ;;  %v1130_v48 = vadd.f32 %v1127_v37, %v1122_v41 }
 0x1b4   : > { %v1133_v27 = vadd.f32 %v1129_v60, %v2141_v23  ;;  %v1134_v19 = vadd.f32 %v1131_v47, %v1130_v48 }
 0x1b6   : > { %v1135_v13 = vmax.f32 %v1133_v27, 0.0  ;;  %v1136_v17 = vmax.f32 %v1134_v19, 0.0 }
 0x1b8   : > { %v1139_v5 = vcombine.low %v1135_v13, %v1136_v17 }
 0x1ba   : > { %1141 = vst [vmem:[%s298_s17] sm:$0xff] %v1139_v5 }
 0x1bb   : > { %1351 = shalt.err (!%p1348_p3)
}
 0x1bc   : > { %s1352_s26 = scalar_lea.hbm %s2047_s21, 128  ;;  %s1356_s13 = scalar_lea.hbm %s2097_s8, 256 }
 0x1bd   : > { %p1353_p4 = scmp.ne.s32.totalorder %s2047_s21, %s1352_s26  ;;  %p1357_p9 = scmp.lt.u32.totalorder %s2047_s21, %s2097_s8 }
 0x1be   : > { %p1358_p10 = scmp.lt.u32.totalorder %s1356_s13, %s1352_s26  ;;  %p1360_p12 = scmp.lt.u32.totalorder %s1352_s26, %s2047_s21 }
 0x1bf   : > { %p1354_p7 = pnand %p1353_p4, %p1510_p5 }
 0x1c0   : > { %p1359_p11 = por %p1358_p10, %p1357_p9 }
 0x1c1   : > { %p1355_p8 = pneg %p1354_p7 }
 0x1c2   : > { %p1361_p13 = por %p1360_p12, %p1359_p11 }
 0x1c4   : > { %p1362_p0 = pnand %p1361_p13, %p1355_p8 }
 0x1c6   : > { %1365 = shalt.err (!%p1362_p0)
}
 0x1c7   : > { %1237 = dma.vmem_to_hbm [thread:$0]  (%p1510_p5), %s2049_s18, 128, %s2047_s21, %s1143_s22  }
 0x1c8 PF: > { %p1243_p1 = scmp.ge.s32.totalorder %s1400_s30, 2  ;;  %s1169_s20 = sand.u32 1, %s1388_s27  }
 0x1c9   : > { %s1170_s23 = scalar_lea.sflag [#allocation3], %s1169_s20 }
 0x1ca   : > { %p1240_p2 = pnand %p1243_p1, %p1514_p6 }
 0x1cc   : > { %1383 = dma.done.wait (!%p1240_p2), %s1170_s23, 128  }
 0x1cd   : > { %1385 = vsyncadd (!%p1240_p2), %s1170_s23, 4294967168  ;;  %p18_p3 = scmp.ge.s32.totalorder %s1497_s11, 4   ;;  %s2142_s27 = smov %s1392_s28 }
 0x1ce   : > { %s2143_s28 = smov %s1396_s29  ;;  %s2144_s29 = smov %s1508_s14 }
 0x1cf   : > { %s2145_s30 = smov %s1497_s11  ;;  %20 = sbr.rel (!%p18_p3) target bundleno = 3 (0x3), region = 94 }
 0x1d6   :  { %1175 = vsyncpa [#allocation3], 1 }
 0x1d7   :  { %1177 = vsyncpa [#allocation3 + $0x1], 1 }

</bundles_post_ra>
